<compile_context>
chip_gen: v5e
topology: v5e:2x2
jax: 0.10.0
libtpu: 0.0.40
codegen_flags: <defaults>
</compile_context>

<pallas_src>
import math
import functools

import jax
import jax.numpy as jnp
from jax.experimental import pallas as pl
from jax.experimental.pallas import tpu as pltpu


# --------------------------------------------------------------------------- #
# Small integer helpers (wrapper-side, plain Python ints).
# --------------------------------------------------------------------------- #
def _round_up(x, m):
    return ((x + m - 1) // m) * m


def _cdiv(a, b):
    return (a + b - 1) // b


def _sublane(itemsize):
    # Sublane tile: 8 rows for 4-byte dtypes, 16 for 2-byte, 32 for 1-byte.
    return max(8, 32 // itemsize)


def _block_footprint(rb, hw_tile, C, itemsize):
    """Padded VMEM bytes for one double-buffered set of blocks (img + out +
    spectral column + spatial rows), accounting for (sublane, 128) tiling."""
    sub = _sublane(itemsize)
    rbp = _round_up(rb, sub)
    nbp = _round_up(max(1, rb // C), sub)
    hwp = _round_up(hw_tile, 128)
    per_copy = (2 * rbp * hwp        # img in-block + out-block
                + rbp * 128          # spectral (rb, 1) column
                + nbp * hwp          # spatial (rb//C, hw) rows
                ) * itemsize
    return 2 * per_copy              # double-buffered by the Pallas pipeline


def _vmem_budget():
    """(per-step block budget, physical VMEM) chosen per TPU generation."""
    phys = 64 << 20                                   # conservative: v7x per-TC
    try:
        info = pltpu.get_tpu_info()
        phys = int(getattr(info, "vmem_capacity_bytes", phys) or phys)
    except Exception:
        pass
    if phys >= (100 << 20):          # v5e / v6e: 128 MiB physical VMEM
        budget = 48 << 20
    else:                            # v7x: 64 MiB per TensorCore
        budget = 24 << 20
    return budget, phys


def _choose_tiling(B, C, HW, itemsize, budget):
    """Pick (row_block, hw_block) for the folded (B*C, HW) layout.

    Legal row blocks (so every BlockSpec dim is a multiple of the sublane tile
    or equal to the full array dim): multiples of C*sublane, or the full B*C.
    Legal hw blocks: multiples of 128, or the full HW.
    """
    sub = _sublane(itemsize)
    lane = 128
    R = B * C
    hw_pad = _round_up(HW, lane)

    row_grain = C * sub
    rb = R if row_grain > R else row_grain
    hw_tile = HW

    if _block_footprint(rb, HW, C, itemsize) > budget:
        # Even the minimal row block is too big at full HW -> tile the lane axis.
        hw_tile = lane
        while (hw_tile + lane <= hw_pad and
               _block_footprint(rb, hw_tile + lane, C, itemsize) <= budget):
            hw_tile += lane
        hw_tile = min(hw_tile, HW)
        # TODO(synk): no sub-channel row tiling; a single (C*sublane, 128) block
        # is assumed to fit VMEM (true for any realistic channel count).
    else:
        # Grow the row block (in row_grain steps) to fill the budget.
        while (rb + row_grain <= R and
               _block_footprint(rb + row_grain, HW, C, itemsize) <= budget):
            rb += row_grain

    # ---- step-count shaping ------------------------------------------------
    # >= 2 grid steps so both v7x TensorCores get work, ~8 steps for good
    # pipelining, but never shrink a block below ~1 MiB of payload except to
    # reach 2 steps.
    MIN_PAYLOAD = 1 << 20

    def payload(rb_, hwt_):
        return _round_up(rb_, sub) * _round_up(hwt_, lane) * itemsize

    def steps(rb_, hwt_):
        return _cdiv(R, rb_) * _cdiv(HW, hwt_)

    changed = True
    while changed and steps(rb, hw_tile) < 8:
        changed = False
        need2 = steps(rb, hw_tile) < 2
        if rb > row_grain:                               # split rows first
            cand = row_grain * _cdiv(rb // row_grain, 2)
            if cand < rb and (need2 or payload(cand, hw_tile) >= MIN_PAYLOAD):
                rb = cand
                changed = True
                continue
        hw_blocks = _cdiv(_round_up(hw_tile, lane), lane)
        if hw_blocks > 1:                                # then split lanes
            cand = lane * _cdiv(hw_blocks, 2)
            if cand < hw_tile and (need2 or payload(rb, cand) >= MIN_PAYLOAD):
                hw_tile = cand
                changed = True
                continue
    return rb, hw_tile


# --------------------------------------------------------------------------- #
# Kernel
# --------------------------------------------------------------------------- #
def _masking_kernel(img_ref, spec_ref, spat_ref, out_ref, *, channels):
    """img (rb, hw), spec (rb, 1), spat (rb//C, hw) -> out (rb, hw).

    keep = (spectral OR spatial) mask; the centre pixel was already folded into
    the spatial mask by the wrapper, so the body is a single fused select.
    """
    img = img_ref[...]                                   # (rb, hw)
    spec = spec_ref[...].astype(jnp.float32)             # (rb, 1)
    spat = spat_ref[...]                                  # (nb, hw)
    rb = img.shape[0]
    nb = spat.shape[0]

    # Binarise; also sanitises garbage in ragged (out-of-bounds) blocks so it
    # cannot poison valid rows through the expansion matmul (NaN > 0 == False).
    spat_bin = (spat > 0).astype(jnp.float32)

    if nb == 1:
        # Block holds a single batch: plain lane-wise broadcast.
        spat_rows = spat_bin                               # (1, hw)
    else:
        # Expand per-batch rows to per-(batch, channel) rows with a tiny
        # one-hot matmul on the MXU (keeps the VPU path to a single select).
        r = jax.lax.broadcasted_iota(jnp.int32, (rb, nb), 0)
        q = jax.lax.broadcasted_iota(jnp.int32, (rb, nb), 1) * channels
        expand = jnp.logical_and(r >= q, r < q + channels).astype(jnp.float32)
        spat_rows = jnp.dot(expand, spat_bin, preferred_element_type=jnp.float32)

    keep = (spec + spat_rows) > 0.0
    out_ref[...] = jnp.where(keep, img, jnp.zeros_like(img))


# --------------------------------------------------------------------------- #
# Mask construction (reproduces torch.rand > ratio + nearest-neighbour resize)
# --------------------------------------------------------------------------- #
def _nearest_indices(out_size, in_size):
    # PyTorch F.interpolate(mode='nearest'): src_idx = floor(dst_idx * in/out)
    return (jnp.arange(out_size) * in_size) // out_size


def build_masks(key, B, C, H, W, *, ratio, spectral_block_size,
                spatial_block_size, use_spectral, use_spatial, dtype):
    """Full-resolution {0,1} masks: spectral (B, C) and spatial (B, 1, H, W)."""
    k_spec, k_spat = jax.random.split(key)
    no_mask = (not use_spectral) and (not use_spatial)

    # spectral: (B, round(C/blk)) -> nearest upsample along channels -> (B, C)
    if use_spectral:
        cs = max(1, round(C / spectral_block_size))
        spec_small = (jax.random.uniform(k_spec, (B, cs)) > ratio).astype(dtype)
        spec_full = jnp.take(spec_small, _nearest_indices(C, cs), axis=-1)
    else:
        spec_full = (jnp.ones if no_mask else jnp.zeros)((B, C), dtype)

    # spatial: (B,1,round(H/blk),round(W/blk)) -> nearest resize -> (B,1,H,W)
    if use_spatial:
        hs = max(1, round(H / spatial_block_size))
        ws = max(1, round(W / spatial_block_size))
        spat_small = (jax.random.uniform(k_spat, (B, 1, hs, ws)) > ratio).astype(dtype)
        spat_full = jnp.take(spat_small, _nearest_indices(H, hs), axis=2)
        spat_full = jnp.take(spat_full, _nearest_indices(W, ws), axis=3)
    else:
        spat_full = jnp.zeros((B, 1, H, W), dtype)

    return spec_full, spat_full
    # TODO(synk): for latency-critical tiny shapes, move mask generation
    # in-kernel with pltpu.prng_seed / pltpu.prng_random_bits to fuse the whole
    # forward into one pallas_call.


# --------------------------------------------------------------------------- #
# Forward wrapper
# --------------------------------------------------------------------------- #
def masking_forward(img, key, *, ratio, spectral_block_size, spatial_block_size,
                    use_spectral=True, use_spatial=True):
    B, C, H, W = img.shape
    assert H % 2 == 1 and W % 2 == 1 and H == W, "cant set middle point"
    mid = H // 2
    HW = H * W
    mid_flat = mid * W + mid

    spec, spat = build_masks(
        key, B, C, H, W, ratio=ratio,
        spectral_block_size=spectral_block_size,
        spatial_block_size=spatial_block_size,
        use_spectral=use_spectral, use_spatial=use_spatial, dtype=img.dtype)

    # Row-folded, lane-dense views (free reshapes, contiguous).
    R = B * C
    img2 = img.reshape(R, HW)
    spec2 = spec.reshape(R, 1)
    # Fold the centre-pixel restore into the spatial mask (always kept).
    spat2 = spat.reshape(B, HW).at[:, mid_flat].set(1)

    itemsize = jnp.dtype(img.dtype).itemsize
    budget, phys = _vmem_budget()
    rb, hw_tile = _choose_tiling(B, C, HW, itemsize, budget)
    nb_blk = max(1, rb // C)

    fp = _block_footprint(rb, hw_tile, C, itemsize)
    vmem_limit = int(min(phys * 3 // 4, max(budget, fp) + (16 << 20)))

    grid = (_cdiv(R, rb), _cdiv(HW, hw_tile))
    kernel = functools.partial(_masking_kernel, channels=C)

    out2 = pl.pallas_call(
        kernel,
        out_shape=jax.ShapeDtypeStruct((R, HW), img.dtype),
        grid=grid,
        in_specs=[
            pl.BlockSpec((rb, hw_tile), lambda ri, hj: (ri, hj)),
            pl.BlockSpec((rb, 1), lambda ri, hj: (ri, 0)),
            pl.BlockSpec((nb_blk, hw_tile), lambda ri, hj: (ri, hj)),
        ],
        out_specs=pl.BlockSpec((rb, hw_tile), lambda ri, hj: (ri, hj)),
        compiler_params=pltpu.CompilerParams(
            dimension_semantics=("parallel", "parallel"),
            vmem_limit_bytes=vmem_limit),
    )(img2, spec2, spat2)
    # TODO(synk): optionally pass input_output_aliases={0: 0} when the caller
    # donates img (the PyTorch module clones, so we do not alias by default).
    return out2.reshape(B, C, H, W)


# --------------------------------------------------------------------------- #
# Demo / correctness check
# --------------------------------------------------------------------------- #
if __name__ == "__main__":
    # Module config (synthetic, deterministic). No learnable weights in
    # __init__; augmentation_params are not used in forward().
    cfg = dict(ratio=0.5, spectral_block_size=2, spatial_block_size=4,
               use_spectral=True, use_spatial=True)   # mask_co path

    B, C, H, W = 2, 4, 17, 17        # H, W must be odd and equal
    key = jax.random.PRNGKey(0)
    k_img, k_mask = jax.random.split(key)
    img = jax.random.normal(k_img, (B, C, H, W), jnp.float32)

    out = masking_forward(img, k_mask, **cfg)
    out = jax.block_until_ready(out)

    # Pure-JAX reference (same masks) for a correctness sanity check.
    spec, spat = build_masks(
        k_mask, B, C, H, W, ratio=cfg["ratio"],
        spectral_block_size=cfg["spectral_block_size"],
        spatial_block_size=cfg["spatial_block_size"],
        use_spectral=cfg["use_spectral"], use_spatial=cfg["use_spatial"],
        dtype=img.dtype)
    mid = H // 2
    ref = jnp.where((spec.reshape(B, C, 1, 1) + spat) > 0.0, img, 0.0)
    ref = ref.at[:, :, mid, mid].set(img[:, :, mid, mid])

    assert out.shape == (B, C, H, W)
    assert jnp.allclose(out, ref), "mismatch vs reference"
    # middle pixel must be untouched
    assert jnp.allclose(out[:, :, mid, mid], img[:, :, mid, mid])

    print("KERNEL_OK")
</pallas_src>

<mosaic_0001>
module attributes {stable_mosaic.version = 11 : i64} {
  func.func @_masking_kernel(%arg0: i32, %arg1: i32, %arg2: memref<8x256xf32, #tpu.memory_space<vmem>>, %arg3: memref<8x1xf32, #tpu.memory_space<vmem>>, %arg4: memref<2x256xf32, #tpu.memory_space<vmem>>, %arg5: memref<8x256xf32, #tpu.memory_space<vmem>>) attributes {dimension_semantics = [#tpu.dimension_semantics<parallel>, #tpu.dimension_semantics<parallel>], iteration_bounds = array<i64: 1, 2>, scalar_prefetch = 0 : i64, scratch_operands = 0 : i64, tpu.core_type = #tpu.core_type<tc>, window_params = [{transform_indices = @transform_0, window_bounds = array<i64: 8, 256>}, {transform_indices = @transform_1, window_bounds = array<i64: 8, 1>}, {transform_indices = @transform_2, window_bounds = array<i64: 2, 256>}, {transform_indices = @transform_3, window_bounds = array<i64: 8, 256>}]} {
    %c0 = arith.constant 0 : index
    %c0_0 = arith.constant 0 : index
    %0 = vector.load %arg2[%c0, %c0_0] : memref<8x256xf32, #tpu.memory_space<vmem>>, vector<8x256xf32>
    %c0_1 = arith.constant 0 : index
    %c0_2 = arith.constant 0 : index
    %1 = vector.load %arg3[%c0_1, %c0_2] : memref<8x1xf32, #tpu.memory_space<vmem>>, vector<8x1xf32>
    %c0_3 = arith.constant 0 : index
    %c0_4 = arith.constant 0 : index
    %2 = vector.load %arg4[%c0_3, %c0_4] : memref<2x256xf32, #tpu.memory_space<vmem>>, vector<2x256xf32>
    %cst = arith.constant 0.000000e+00 : f32
    %3 = vector.broadcast %cst : f32 to vector<2x256xf32>
    %4 = arith.cmpf ogt, %2, %3 : vector<2x256xf32>
    %5 = arith.extui %4 : vector<2x256xi1> to vector<2x256xi32>
    %6 = arith.sitofp %5 : vector<2x256xi32> to vector<2x256xf32>
    %7 = tpu.iota {dimensions = array<i32: 0>} : vector<8x2xi32>
    %8 = tpu.iota {dimensions = array<i32: 1>} : vector<8x2xi32>
    %c4_i32 = arith.constant 4 : i32
    %9 = vector.broadcast %c4_i32 : i32 to vector<8x2xi32>
    %10 = arith.muli %8, %9 : vector<8x2xi32>
    %11 = arith.cmpi sge, %7, %10 : vector<8x2xi32>
    %c4_i32_5 = arith.constant 4 : i32
    %12 = vector.broadcast %c4_i32_5 : i32 to vector<8x2xi32>
    %13 = arith.addi %10, %12 : vector<8x2xi32>
    %14 = arith.cmpi slt, %7, %13 : vector<8x2xi32>
    %15 = arith.andi %11, %14 : vector<8x2xi1>
    %16 = arith.extui %15 : vector<8x2xi1> to vector<8x2xi32>
    %17 = arith.sitofp %16 : vector<8x2xi32> to vector<8x2xf32>
    %cst_6 = arith.constant dense<0.000000e+00> : vector<8x256xf32>
    %18 = tpu.matmul %17, %6, %cst_6 {dimension_numbers = #tpu.dot_dimension_numbers<[1], [0], [0], [1], [0, 0, 1, 1], [], []>} : vector<8x2xf32>, vector<2x256xf32>, vector<8x256xf32> -> vector<8x256xf32>
    %19 = vector.broadcast %1 : vector<8x1xf32> to vector<8x256xf32>
    %20 = arith.addf %19, %18 : vector<8x256xf32>
    %cst_7 = arith.constant 0.000000e+00 : f32
    %21 = vector.broadcast %cst_7 : f32 to vector<8x256xf32>
    %22 = arith.cmpf ogt, %20, %21 : vector<8x256xf32>
    %cst_8 = arith.constant 0.000000e+00 : f32
    %23 = vector.broadcast %cst_8 : f32 to vector<8x256xf32>
    %24 = arith.select %22, %0, %23 : vector<8x256xi1>, vector<8x256xf32>
    %c0_9 = arith.constant 0 : index
    %c0_10 = arith.constant 0 : index
    %25 = vector.load %arg5[%c0_9, %c0_10] : memref<8x256xf32, #tpu.memory_space<vmem>>, vector<8x256xf32>
    tpu.vector_store %arg5[%c0_9, %c0_10], %24 {strides = array<i32>} : memref<8x256xf32, #tpu.memory_space<vmem>>, vector<8x256xf32>,
    return
  }
  func.func @transform_0(%arg0: i32, %arg1: i32) -> (i32, i32) {
    %c0_i32 = arith.constant 0 : i32
    return %arg0, %arg1 : i32, i32
  }
  func.func @transform_1(%arg0: i32, %arg1: i32) -> (i32, i32) {
    %c0_i32 = arith.constant 0 : i32
    %c0_i32_0 = arith.constant 0 : i32
    return %arg0, %c0_i32 : i32, i32
  }
  func.func @transform_2(%arg0: i32, %arg1: i32) -> (i32, i32) {
    %c0_i32 = arith.constant 0 : i32
    return %arg0, %arg1 : i32, i32
  }
  func.func @transform_3(%arg0: i32, %arg1: i32) -> (i32, i32) {
    %c0_i32 = arith.constant 0 : i32
    return %arg0, %arg1 : i32, i32
  }
}

</mosaic_0001>

<bundles_post_ra>
// kernel: tpu_custom_call.1
= control target key start
LH: loop header
LB: loop body
LE: loop exit
PB: predicated region body
PF: predicated region fallthrough
CT: control target
= control target key end

     0   :  { %8 = vsyncpa [#allocation3], 0  ;;  %s955_s0 = inlined_call_operand.hbm [shape: f32[8,289], index: 0, kind: input, shape index: {}]   ;;  %s956_s1 = inlined_call_operand.vmem [shape: f32[8,1], index: 1, kind: input, shape index: {}]   ;;  %s957_s2 = inlined_call_operand.vmem [shape: f32[2,289], index: 2, kind: input, shape index: {}]   ;;  %s958_s3 = inlined_call_operand.hbm [shape: f32[8,289], index: 3, kind: output, shape index: {}]  }
   0x1   :  { %10 = vsyncpa [#allocation3 + $0x1], 0 }
   0x2   :  { %11 = vsyncpa [#allocation4], 0 }
   0x3   :  { %13 = vsyncpa [#allocation4 + $0x1], 0  ;;  %s774_s12 = smov 0   ;;  %s776_s13 = smov 0  }
   0x4   :  { %s778_s14 = smov 0   ;;  %s780_s15 = smov 0  }
   0x5   :  { %s782_s16 = smov 0   ;;  %s784_s17 = smov 0  }
   0x6 LB: > { %s524_s18 = sadd.s32 4294967295, %s748_s17   ;;  %s525_s19 = sadd.s32 4294967294, %s748_s17   ;;  %s748_s17 = sphi %s784_s17, %s19_s17   ;;  %s744_s16 = sphi %s782_s16, %s971_s16   ;;  %s740_s15 = sphi %s780_s15, %s970_s15   ;;  %s736_s14 = sphi %s778_s14, %s969_s14   ;;  %s732_s13 = sphi %s776_s13, %s968_s13   ;;  %s728_s12 = sphi %s774_s12, %s967_s12  }
   0x7   : > { %s28_s20 = sadd.s32 1, %s744_s16  ;;  %s40_s21 = sadd.s32 1, %s736_s14 }
   0x8   : > { %p29_p0 = scmp.ge.s32.totalorder %s28_s20, 2  ;;  %p47_p1 = scmp.ne.s32.totalorder %s736_s14, %s732_s13 }
   0x9   : > { %p48_p2 = scmp.eq.s32.totalorder %s748_s17, 0  ;;  %p53_p3 = scmp.ne.s32.totalorder %s732_s13, %s728_s12 }
   0xa   : > { %s973_s20 = smov (%p29_p0, %s28_s20), 0  ;;  %p54_p5 = scmp.eq.s32.totalorder %s524_s18, 0 }
   0xb   : > { %960 = sst [smem:[#allocation8_spill]] %s973_s20  ;;  %p49_p4 = por %p48_p2, %p47_p1 }
   0xc   : > { %s36_s22 = ssub.s32 %s744_s16, %s973_s20  ;;  %p133_p6 = scmp.eq.s32.totalorder %s524_s18, 1 }
   0xd   : > { %p38_p7 = scmp.eq.s32.totalorder %s36_s22, 0  ;;  %p817_p8 = por %p54_p5, %p53_p3 }
   0xe   : > { %p821_p9 = por %p133_p6, %p47_p1  ;;  %p139_p10 = scmp.eq.s32.totalorder %s525_s19, 1 }
   0xf   : > { %s826_s25 = scalar_select %p38_p7, %s736_s14, %s40_s21  }
  0x10   : > { %p828_p11 = por %p139_p10, %p53_p3  ;;  %p528_p12 = scmp.ge.s32.totalorder %s748_s17, 2 }
  0x12   : > { %162 = sbr.rel (%p528_p12) target bundleno = 58 (0x3a), region = 20 }
  0x17   : > { %165 = sbr.rel (!%p49_p4) target bundleno = 58 (0x3a), region = 24  ;;  %s166_s27 = sand.u32 (%p49_p4), 1, %s736_s14  }
  0x18   : > { %s530_s28 = sshll.u32 (%p49_p4), %s744_s16, 1  ;;  %s529_s29 = sshll.u32 (%p49_p4), %s166_s27, 4 }
  0x19   : > { %s172_s30 = ssub.s32 (%p49_p4), 3, %s530_s28  ;;  %s840_s7 = scalar_lea.sflag (%p49_p4), [#allocation3], %s166_s27 }
  0x1a   : > { %p173_p13 = scmp.lt.s32.totalorder (%p49_p4), %s172_s30, 2  ;;  %s170_s8 = scalar_lea.vmem (%p49_p4), [#allocation2], %s529_s29 }
  0x1c   : > { %s975_s30 = smov (!%p173_p13, %s172_s30), 2 }
  0x1d   : > { %s531_s4 = sshll.u32 %s975_s30, 3 }
  0x1e   : > { %s176_s5 = ssub.s32 16, %s531_s4 }
  0x1f   : > { %s177_s6 = sshll.u32 %s176_s5, 4 }
  0x20   : > { %178 = vsyncadd %s840_s7, %s177_s6  ;;  %p843_p0 = scmp.ne.s32.totalorder %s531_s4, 0  ;;  %s556_s10 = sshll.u32 %s744_s16, 4 }
  0x21   : > { %s183_s19 = scalar_lea.hbm %s955_s0, %s556_s10  ;;  %s535_s21 = sshll.u32 %s975_s30, 7 }
  0x22   : > { %s186_s22 = sshll.u32 %s183_s19, 4  ;;  %s188_s27 = sshll.u32 %s170_s8, 4  ;;  %s187_s22 = int_to_ptr.hbm [resolvable:$true] %s186_s22  ;;  %s189_s27 = int_to_ptr.vmem [resolvable:$true] %s188_s27 }
  0x23   : > { %s616_s28 = sshra.s32 %s187_s22, 4  ;;  %s618_s29 = sshrl.u32 %s535_s21, 4  ;;  %s617_s28 = int_to_ptr.hbm [resolvable:$true] %s616_s28 }
  0x24   : > { %s623_s5 = scalar_lea.hbm %s617_s28, %s618_s29  ;;  %s627_s20 = scalar_lea.hbm %s955_s0, 24 }
  0x25   : > { %p624_p1 = scmp.ne.s32.totalorder %s617_s28, %s623_s5  ;;  %p629_p4 = scmp.lt.s32.totalorder %s627_s20, %s623_s5 }
  0x27   : > { %p625_p2 = pnand %p624_p1, %p843_p0 }
  0x29   : > { %p626_p3 = pneg %p625_p2 }
  0x2b   : > { %p631_p5 = pnand %p629_p4, %p626_p3 }
  0x2d   : > { %634 = shalt.err (!%p631_p5)
}
  0x2e   : > { %s635_s10 = sshra.s32 %s189_s27, 4  ;;  %s750_s11 = smov [#allocation2]   ;;  %s636_s10 = int_to_ptr.vmem [resolvable:$true] %s635_s10 }
  0x2f   : > { %s642_s8 = scalar_lea.vmem %s636_s10, %s618_s29  ;;  %s646_s18 = scalar_lea.vmem %s750_s11, 32 }
  0x30   : > { %p643_p6 = scmp.ne.s32.totalorder %s636_s10, %s642_s8  ;;  %p648_p13 = scmp.lt.s32.totalorder %s646_s18, %s642_s8 }
  0x32   : > { %p644_p7 = pnand %p643_p6, %p843_p0 }
  0x34   : > { %p645_p10 = pneg %p644_p7 }
  0x36   : > { %p650_p1 = pnand %p648_p13, %p645_p10 }
  0x38   : > { %653 = shalt.err (!%p650_p1)
}
  0x39   : > { %191 = dma.hbm_to_vmem [thread:$0]  (%p843_p0), %s187_s22, %s535_s21, %s189_s27, %s840_s7  }
  0x3a PF: > { %p536_p2 = scmp.ge.s32.totalorder %s748_s17, 1  ;;  %p214_p3 = scmp.lt.s32.totalorder %s748_s17, 3 }
  0x3c   : > { %p215_p4 = pnand %p536_p2, %p214_p3 }
  0x3d   : > { %s869_s20 = sand.u32 (!%p215_p4), 1, %s732_s13  }
  0x3e   : > { %218 = sbr.rel (%p215_p4) target bundleno = 249 (0xf9), region = 32  ;;  %s537_s9 = sshll.u32 (!%p215_p4), %s869_s20, 4 }
  0x3f   : > { %s221_s19 = scalar_lea.sflag (!%p215_p4), [#allocation3], %s869_s20  ;;  %s875_s30 = scalar_lea.vmem (!%p215_p4), [#allocation2], %s537_s9 }
  0x43   : > { %719 = dma.done.wait (%p817_p8), %s221_s19, 256  }
  0x44   : > { %721 = vsyncadd (%p817_p8), %s221_s19, 4294967040  ;;  %s882_s7 = sshll.u32 %s740_s15, 1  ;;  %v304_v0 = vlaneseq  ;;  %v751_v2 = vmov 0   ;;  %v299_v7 = vld [vmem:[%s956_s1] sm:$0xff]  ;;  %v752_v8 = vmov 0.0   ;;  %vm323_vm4 = vcmask 1041408  }
  0x45   : > { %p281_p0 = scmp.lt.s32.totalorder %s882_s7, 2  ;;  %615 = vset.pattern.permute.xlu0 %v751_v2  ;;  %vm319_vm5 = vcmask 15360   ;;  %v297_v16 = vld [vmem:[%s875_s30] sm:$0xff]  ;;  %v298_v17 = vld [vmem:[%s875_s30 + $0x8] sm:$0xff]  ;;  %s264_s4 = scalar_lea.vmem [#allocation5], %s537_s9 }
  0x46   : > { %v307_v1 = vand.u32 127, %v304_v0  ;;  %v305_v4 = vshrl.u32 %v304_v0, 7  ;;  %370 = vperm.xlu0 %615, %v299_v7   ;;  %s382_s6 = scalar_lea.sflag [#allocation4], %s869_s20  ;;  %s390_s10 = ssub.s32 (%p821_p9), 3, %s882_s7 }
  0x47   : > { %s282_s21 = scalar_select %p281_p0, %s882_s7, 2 }
  0x48   : > { %v308_v3 = vmul.u32 4, %v307_v1  ;;  %p391_p8 = scmp.lt.s32.totalorder (%p821_p9), %s390_s10, 2 }
  0x49   : > { %s540_s22 = sshll.u32 %s282_s21, 1 }
  0x4a   : > { %s286_s29 = scalar_lea.vmem %s957_s2, %s540_s22  ;;  %v310_v5 = vadd.s32 4, %v308_v3  ;;  %vm309_vm1 = vcmp.ge.s32.totalorder %v305_v4, %v308_v3 }
  0x4b   : > { %v300_v6 = vld [vmem:[%s286_s29] sm:$0xf] }
  0x4c   : > { %vm301_vm0 = vcmp.gt.f32.partialorder %v300_v6, 0.0  ;;  %vm311_vm2 = vcmp.lt.s32.totalorder %v305_v4, %v310_v5 }
  0x4d   : > { %v541_v9 = vsel %vm301_vm0, 1.0, %v752_v8  ;;  %vm312_vm3 = vmand %vm309_vm1, %vm311_vm2 }
  0x4e   : > { %316 = vst [vmem:[#allocation1] ss:$4 sm:$0xff] %v541_v9  ;;  %v542_v10 = vsel %vm312_vm3, 1.0, %v752_v8 }
  0x55   : > { %v317_v11 = vld.sshfl [vmem:[#allocation1] sm:$0xff pattern:$0x73625140]  ;;  %v318_v12 = vld.sshfl [vmem:[#allocation1 + $0x8] sm:$0xff pattern:$0x73625140] }
  0x56   : > { %543 = vmatpush.msk.msra.mxu0 %vm323_vm4, %v317_v11  ;;  %545 = vmatpush.msk.msra.mxu1 %vm323_vm4, %v318_v12 }
  0x57   : > { %544 = vmatmul.msk.f32.vlgmr.msra.gmra.mxu0 %vm319_vm5, %v542_v10  ;;  %546 = vmatmul.msk.f32.vlgmr.msra.gmra.mxu1 %vm319_vm5, %v542_v10 }
  0xb8   : > { %v371_v13 = vpop.permute.xlu0 %370 }
  0xd4   : > { %v345_v14 = vpop.f32.mrf.mxu0  ;;  %v365_v15 = vpop.f32.mrf.mxu1 }
  0xd5   : > { %v373_v18 = vadd.f32 %v371_v13, %v345_v14  ;;  %v374_v19 = vadd.f32 %v371_v13, %v365_v15 }
  0xd6   : > { %388 = sbr.rel (!%p821_p9) target bundleno = 249 (0xf9), region = 40 }
  0xd7   : > { %vm375_vm6 = vcmp.gt.f32.partialorder %v373_v18, 0.0  ;;  %vm376_vm7 = vcmp.gt.f32.partialorder %v374_v19, 0.0 }
  0xd8   : > { %v377_v20 = vsel %vm375_vm6, %v297_v16, 0.0  ;;  %v378_v21 = vsel %vm376_vm7, %v298_v17, 0.0 }
  0xd9   : > { %379 = vst [vmem:[%s264_s4] sm:$0xff] %v377_v20 }
  0xda   : > { %380 = vst [vmem:[%s264_s4 + $0x8] sm:$0xff] %v378_v21 }
  0xdb   : > { %s977_s10 = smov (!%p391_p8, %s390_s10), 2 }
  0xdc   : > { %s549_s8 = sshll.u32 %s977_s10, 3 }
  0xdd   : > { %s394_s11 = ssub.s32 16, %s549_s8 }
  0xde   : > { %s395_s18 = sshll.u32 %s394_s11, 4 }
  0xdf   : > { %396 = vsyncadd %s382_s6, %s395_s18  ;;  %p905_p5 = scmp.ne.s32.totalorder %s549_s8, 0  ;;  %s557_s24 = sshll.u32 %s740_s15, 4 }
  0xe0   : > { %s401_s7 = scalar_lea.hbm %s958_s3, %s557_s24  ;;  %s553_s21 = sshll.u32 %s977_s10, 7 }
  0xe1   : > { %s404_s22 = sshll.u32 %s264_s4, 4  ;;  %s406_s27 = sshll.u32 %s401_s7, 4  ;;  %s405_s22 = int_to_ptr.vmem [resolvable:$true] %s404_s22  ;;  %s407_s27 = int_to_ptr.hbm [resolvable:$true] %s406_s27 }
  0xe2   : > { %s655_s28 = sshra.s32 %s405_s22, 4  ;;  %s657_s29 = sshrl.u32 %s553_s21, 4  ;;  %s656_s28 = int_to_ptr.vmem [resolvable:$true] %s655_s28 }
  0xe3   : > { %s662_s23 = scalar_lea.vmem %s656_s28, %s657_s29  ;;  %s753_s5 = smov [#allocation5]  }
  0xe4   : > { %p663_p9 = scmp.ne.s32.totalorder %s656_s28, %s662_s23  ;;  %s666_s15 = scalar_lea.vmem %s753_s5, 32 }
  0xe5   : > { %p668_p10 = scmp.lt.s32.totalorder %s666_s15, %s662_s23 }
  0xe6   : > { %p664_p6 = pnand %p663_p9, %p905_p5 }
  0xe8   : > { %p665_p7 = pneg %p664_p6 }
  0xea   : > { %p670_p13 = pnand %p668_p10, %p665_p7 }
  0xec   : > { %673 = shalt.err (!%p670_p13)
}
  0xed   : > { %s674_s8 = sshra.s32 %s407_s27, 4  ;;  %s685_s24 = scalar_lea.hbm %s958_s3, 24  ;;  %s675_s8 = int_to_ptr.hbm [resolvable:$true] %s674_s8 }
  0xee   : > { %s681_s4 = scalar_lea.hbm %s675_s8, %s657_s29  ;;  %p686_p4 = scmp.lt.s32.totalorder %s675_s8, %s958_s3 }
  0xef   : > { %p682_p1 = scmp.ne.s32.totalorder %s675_s8, %s681_s4  ;;  %p687_p0 = scmp.lt.s32.totalorder %s685_s24, %s681_s4 }
  0xf1   : > { %p683_p2 = pnand %p682_p1, %p905_p5  ;;  %p688_p8 = por %p687_p0, %p686_p4 }
  0xf3   : > { %p684_p3 = pneg %p683_p2 }
  0xf5   : > { %p689_p9 = pnand %p688_p8, %p684_p3 }
  0xf7   : > { %692 = shalt.err (!%p689_p9)
}
  0xf8   : > { %409 = dma.vmem_to_hbm [thread:$0]  (%p905_p5), %s405_s22, %s553_s21, %s407_s27, %s382_s6  }
  0xf9 PF: > { %s418_s7 = sand.u32 1, %s728_s12   ;;  %p561_p6 = pnand %p528_p12, %p828_p11 }
  0xfa   : > { %s419_s28 = scalar_lea.sflag [#allocation4], %s418_s7 }
  0xfb   : > { %p562_p7 = pneg %p561_p6 }
  0xfd   : > { %723 = dma.done.wait (%p562_p7), %s419_s28, 256  }
  0xfe   : > { %725 = vsyncadd (%p562_p7), %s419_s28, 4294967040  ;;  %s19_s17 = sadd.s32 1, %s748_s17   ;;  %s966_s20 = sld [smem:[#allocation8_spill]] }
  0xff   : > { %p16_p10 = scmp.ge.s32.totalorder %s19_s17, 4   ;;  %s967_s12 = smov %s732_s13 }
 0x100   : > { %s968_s13 = smov %s736_s14  ;;  %s969_s14 = smov %s826_s25 }
 0x101   : > { %s970_s15 = smov %s744_s16  ;;  %18 = sbr.rel (!%p16_p10) target bundleno = 6 (0x6), region = 83 }
 0x104   : > { %s971_s16 = smov %s966_s20 }
 0x106   :  { %425 = vsyncpa [#allocation3], 1 }
 0x107   :  { %427 = vsyncpa [#allocation3 + $0x1], 1 }
 0x108   :  { %428 = vsyncpa [#allocation4], 1 }
 0x109   :  { %430 = vsyncpa [#allocation4 + $0x1], 1 }

</bundles_post_ra>
